<compile_context>
chip_gen: v5e
topology: v5e:2x2
jax: 0.10.0
libtpu: 0.0.40
codegen_flags: <defaults>
</compile_context>

<pallas_src>
import functools

import jax
import jax.numpy as jnp
from jax.experimental import pallas as pl
from jax.experimental.pallas import tpu as pltpu


def _control_effort_kernel(qT_ref, w1_ref, b1_ref, w2_ref, o_ref, *, pos_dim):
    # qT_ref: (pos_dim, TB)  -- batch on the lane axis (lane-dense)
    # w1_ref: (H, pos_dim), b1_ref/w2_ref: (H, 1)
    qT = qT_ref[...].astype(jnp.float32)                  # widen (bf16 ok upstream)
    w1 = w1_ref[...]                                      # (H, D)

    # Hidden pre-activation z[h, b] = sum_d W1[h, d] * q[b, d] + b1[h]
    # via VPU broadcast-FMAs; (H, TB) intermediates are fully lane-dense.
    z = b1_ref[...]                                       # (H, 1), lane-broadcast once
    for d in range(pos_dim):
        z = z + w1[:, d:d + 1] * qT[d:d + 1, :]           # (H,1)*(1,TB) -> (H,TB)
    h = jnp.tanh(z)                                       # (H, TB), EUP
    g = (1.0 - h * h) * w2_ref[...]                       # (H, TB)

    # control effort = sum_d (dV/dq_d)^2,  dV/dq_d = sum_H g * W1[:, d]
    eff = None
    for d in range(pos_dim):
        dv = jnp.sum(g * w1[:, d:d + 1], axis=0, keepdims=True)   # (1, TB) sublane reduce
        eff = dv * dv if eff is None else eff + dv * dv
    o_ref[...] = eff                                      # (1, TB) unmasked lane-dense store


def _round_up(n, m):
    return ((n + m - 1) // m) * m


def _choose_tiling(b):
    """Return (tile, padded_batch).  Tiles are lane-dense multiples of 256,
    capped at 2048 (v5e scoped VMEM), and give >= 2 grid steps for B >= 512
    so the 'parallel' batch axis shards across v7x's two TensorCores."""
    tb = min(2048, _round_up(b, 256))
    if b >= 512 and _round_up(b, tb) // tb < 2:
        tb = _round_up(pl.cdiv(b, 2), 256)
    b_pad = _round_up(b, tb)
    return tb, b_pad


def control_effort(t, x, params):
    """Pallas implementation of ControlEffort.forward(t, x). Returns (B,)."""
    del t  # unused, as in the PyTorch module
    w1, b1, w2 = params                                   # (H, D), (1, H), (1, H)
    pos_dim = 1 if x.shape[1] == 2 else 2
    h_dim, d_dim = w1.shape
    assert d_dim == pos_dim, (w1.shape, x.shape)

    batch = x.shape[0]
    tb, b_pad = _choose_tiling(batch)
    grid = (b_pad // tb,)

    # Ship only the position columns, transposed so batch lands on the lanes.
    # Keep the input dtype across HBM->VMEM (bf16 halves DMA on v6e/v7x);
    # the kernel widens to f32 for the tanh/accumulation chain.
    qT = jnp.transpose(x[:, :pos_dim])                    # (D, B)
    if b_pad != batch:
        qT = jnp.pad(qT, ((0, 0), (0, b_pad - batch)))    # zero-pad ragged batch

    w1f = w1.astype(jnp.float32)                          # (H, D)
    b1c = b1.astype(jnp.float32).reshape(h_dim, 1)        # (H, 1) column
    w2c = w2.astype(jnp.float32).reshape(h_dim, 1)        # (H, 1) column

    kernel = functools.partial(_control_effort_kernel, pos_dim=pos_dim)
    out = pl.pallas_call(
        kernel,
        out_shape=jax.ShapeDtypeStruct((1, b_pad), jnp.float32),
        grid_spec=pltpu.PrefetchScalarGridSpec(
            num_scalar_prefetch=0,
            grid=grid,
            in_specs=[
                pl.BlockSpec((pos_dim, tb), lambda i: (0, i)),     # q^T, lane-dense
                pl.BlockSpec((h_dim, pos_dim), lambda i: (0, 0)),  # W1
                pl.BlockSpec((h_dim, 1), lambda i: (0, 0)),        # b1 column
                pl.BlockSpec((h_dim, 1), lambda i: (0, 0)),        # w2 column
            ],
            out_specs=pl.BlockSpec((1, tb), lambda i: (0, i)),     # lane-dense output row
        ),
        compiler_params=pltpu.CompilerParams(
            dimension_semantics=("parallel",)),
        cost_estimate=pl.CostEstimate(
            flops=b_pad * h_dim * (4 * pos_dim + 4),
            transcendentals=b_pad * h_dim,
            bytes_accessed=(qT.size * qT.dtype.itemsize
                            + (w1f.size + b1c.size + w2c.size) * 4
                            + b_pad * 4)),
    )(qT, w1f, b1c, w2c)
    return out[0, :batch]                                 # (B,), keepdim=False


def _reference(t, x, params):
    """Pure-JAX reference (autograd of the potential, as the PyTorch code does)."""
    w1, b1, w2 = params
    q = x[:, :1] if x.shape[1] == 2 else x[:, :2]

    def v_sum(qq):
        return jnp.sum(jnp.tanh(qq @ w1.T + b1) @ w2.T)

    dvdq = jax.grad(v_sum)(q)
    u = -dvdq
    return jnp.sum(u * u, axis=1)


if __name__ == "__main__":
    key = jax.random.PRNGKey(0)
    k1, k2, k3, k4, k5, k6 = jax.random.split(key, 6)

    B = 8       # batch
    STATE = 4   # state dim (q = first 2 components, p = last 2)
    D = 2       # position dim
    H = 32      # hidden width of the potential MLP

    # deterministic parameter init for the potential V(q)
    w1 = jax.random.normal(k1, (H, D), jnp.float32) * 0.5
    b1 = jax.random.normal(k2, (1, H), jnp.float32) * 0.1
    w2 = jax.random.normal(k3, (1, H), jnp.float32) * 0.5
    params = (w1, b1, w2)

    x = jax.random.normal(k4, (B, STATE), jnp.float32)
    t = jnp.float32(0.0)

    out = jax.block_until_ready(control_effort(t, x, params))
    ref = _reference(t, x, params)
    assert out.shape == (B,)
    assert jnp.allclose(out, ref, atol=1e-5, rtol=1e-5), (out, ref)

    # secondary check: 2-D state (pos_dim == 1 branch)
    w1b = jax.random.normal(k5, (H, 1), jnp.float32) * 0.5
    params_b = (w1b, b1, w2)
    x2 = jax.random.normal(k6, (B, 2), jnp.float32)
    out2 = jax.block_until_ready(control_effort(t, x2, params_b))
    ref2 = _reference(t, x2, params_b)
    assert out2.shape == (B,)
    assert jnp.allclose(out2, ref2, atol=1e-5, rtol=1e-5), (out2, ref2)

    print("KERNEL_OK")
</pallas_src>

<mosaic_0001>
module attributes {stable_mosaic.version = 11 : i64} {
  func.func @_control_effort_kernel(%arg0: i32, %arg1: memref<2x256xf32, #tpu.memory_space<vmem>>, %arg2: memref<32x2xf32, #tpu.memory_space<vmem>>, %arg3: memref<32x1xf32, #tpu.memory_space<vmem>>, %arg4: memref<32x1xf32, #tpu.memory_space<vmem>>, %arg5: memref<1x256xf32, #tpu.memory_space<vmem>>) attributes {dimension_semantics = [#tpu.dimension_semantics<parallel>], iteration_bounds = array<i64: 1>, scalar_prefetch = 0 : i64, scratch_operands = 0 : i64, tpu.core_type = #tpu.core_type<tc>, window_params = [{transform_indices = @transform_0, window_bounds = array<i64: 2, 256>}, {pipeline_mode = #tpu.pipeline_mode<synchronous>, transform_indices = @transform_1, window_bounds = array<i64: 32, 2>}, {pipeline_mode = #tpu.pipeline_mode<synchronous>, transform_indices = @transform_2, window_bounds = array<i64: 32, 1>}, {pipeline_mode = #tpu.pipeline_mode<synchronous>, transform_indices = @transform_3, window_bounds = array<i64: 32, 1>}, {transform_indices = @transform_4, window_bounds = array<i64: 1, 256>}]} {
    %c0 = arith.constant 0 : index
    %c0_0 = arith.constant 0 : index
    %0 = vector.load %arg1[%c0, %c0_0] : memref<2x256xf32, #tpu.memory_space<vmem>>, vector<2x256xf32>
    %c0_1 = arith.constant 0 : index
    %c0_2 = arith.constant 0 : index
    %1 = vector.load %arg2[%c0_1, %c0_2] : memref<32x2xf32, #tpu.memory_space<vmem>>, vector<32x2xf32>
    %c0_3 = arith.constant 0 : index
    %c0_4 = arith.constant 0 : index
    %2 = vector.load %arg3[%c0_3, %c0_4] : memref<32x1xf32, #tpu.memory_space<vmem>>, vector<32x1xf32>
    %3 = vector.extract_strided_slice %1 {offsets = [0, 0], sizes = [32, 1], strides = [1, 1]} : vector<32x2xf32> to vector<32x1xf32>
    %4 = vector.extract_strided_slice %0 {offsets = [0, 0], sizes = [1, 256], strides = [1, 1]} : vector<2x256xf32> to vector<1x256xf32>
    %5 = vector.broadcast %3 : vector<32x1xf32> to vector<32x256xf32>
    %6 = vector.broadcast %4 : vector<1x256xf32> to vector<32x256xf32>
    %7 = arith.mulf %5, %6 : vector<32x256xf32>
    %8 = vector.broadcast %2 : vector<32x1xf32> to vector<32x256xf32>
    %9 = arith.addf %8, %7 : vector<32x256xf32>
    %10 = vector.extract_strided_slice %1 {offsets = [0, 1], sizes = [32, 1], strides = [1, 1]} : vector<32x2xf32> to vector<32x1xf32>
    %11 = vector.extract_strided_slice %0 {offsets = [1, 0], sizes = [1, 256], strides = [1, 1]} : vector<2x256xf32> to vector<1x256xf32>
    %12 = vector.broadcast %10 : vector<32x1xf32> to vector<32x256xf32>
    %13 = vector.broadcast %11 : vector<1x256xf32> to vector<32x256xf32>
    %14 = arith.mulf %12, %13 : vector<32x256xf32>
    %15 = arith.addf %9, %14 : vector<32x256xf32>
    %16 = math.tanh %15 : vector<32x256xf32>
    %17 = arith.mulf %16, %16 : vector<32x256xf32>
    %cst = arith.constant 1.000000e+00 : f32
    %18 = vector.broadcast %cst : f32 to vector<32x256xf32>
    %19 = arith.subf %18, %17 : vector<32x256xf32>
    %c0_5 = arith.constant 0 : index
    %c0_6 = arith.constant 0 : index
    %20 = vector.load %arg4[%c0_5, %c0_6] : memref<32x1xf32, #tpu.memory_space<vmem>>, vector<32x1xf32>
    %21 = vector.broadcast %20 : vector<32x1xf32> to vector<32x256xf32>
    %22 = arith.mulf %19, %21 : vector<32x256xf32>
    %23 = vector.extract_strided_slice %1 {offsets = [0, 0], sizes = [32, 1], strides = [1, 1]} : vector<32x2xf32> to vector<32x1xf32>
    %24 = vector.broadcast %23 : vector<32x1xf32> to vector<32x256xf32>
    %25 = arith.mulf %22, %24 : vector<32x256xf32>
    %cst_7 = arith.constant dense<0.000000e+00> : vector<256xf32>
    %26 = vector.multi_reduction <add>, %25, %cst_7 [0] : vector<32x256xf32> to vector<256xf32>
    %27 = vector.shape_cast %26 : vector<256xf32> to vector<1x256xf32>
    %28 = arith.mulf %27, %27 : vector<1x256xf32>
    %29 = vector.extract_strided_slice %1 {offsets = [0, 1], sizes = [32, 1], strides = [1, 1]} : vector<32x2xf32> to vector<32x1xf32>
    %30 = vector.broadcast %29 : vector<32x1xf32> to vector<32x256xf32>
    %31 = arith.mulf %22, %30 : vector<32x256xf32>
    %cst_8 = arith.constant dense<0.000000e+00> : vector<256xf32>
    %32 = vector.multi_reduction <add>, %31, %cst_8 [0] : vector<32x256xf32> to vector<256xf32>
    %33 = vector.shape_cast %32 : vector<256xf32> to vector<1x256xf32>
    %34 = arith.mulf %33, %33 : vector<1x256xf32>
    %35 = arith.addf %28, %34 : vector<1x256xf32>
    %c0_9 = arith.constant 0 : index
    %c0_10 = arith.constant 0 : index
    %36 = vector.load %arg5[%c0_9, %c0_10] : memref<1x256xf32, #tpu.memory_space<vmem>>, vector<1x256xf32>
    tpu.vector_store %arg5[%c0_9, %c0_10], %35 {strides = array<i32>} : memref<1x256xf32, #tpu.memory_space<vmem>>, vector<1x256xf32>,
    return
  }
  func.func @transform_0(%arg0: i32) -> (i32, i32) {
    %c0_i32 = arith.constant 0 : i32
    %c0_i32_0 = arith.constant 0 : i32
    return %c0_i32, %arg0 : i32, i32
  }
  func.func @transform_1(%arg0: i32) -> (i32, i32) {
    %c0_i32 = arith.constant 0 : i32
    %c0_i32_0 = arith.constant 0 : i32
    %c0_i32_1 = arith.constant 0 : i32
    return %c0_i32, %c0_i32_0 : i32, i32
  }
  func.func @transform_2(%arg0: i32) -> (i32, i32) {
    %c0_i32 = arith.constant 0 : i32
    %c0_i32_0 = arith.constant 0 : i32
    %c0_i32_1 = arith.constant 0 : i32
    return %c0_i32, %c0_i32_0 : i32, i32
  }
  func.func @transform_3(%arg0: i32) -> (i32, i32) {
    %c0_i32 = arith.constant 0 : i32
    %c0_i32_0 = arith.constant 0 : i32
    %c0_i32_1 = arith.constant 0 : i32
    return %c0_i32, %c0_i32_0 : i32, i32
  }
  func.func @transform_4(%arg0: i32) -> (i32, i32) {
    %c0_i32 = arith.constant 0 : i32
    %c0_i32_0 = arith.constant 0 : i32
    return %c0_i32, %arg0 : i32, i32
  }
}

</mosaic_0001>

<bundles_post_ra>
// kernel: tpu_custom_call.1
= control target key start
LH: loop header
LB: loop body
LE: loop exit
PB: predicated region body
PF: predicated region fallthrough
CT: control target
= control target key end

     0   :  { %v323_v2 = vmov 0   ;;  %s441_s0 = inlined_call_operand.vmem [shape: f32[2,256], index: 0, kind: input, shape index: {}]   ;;  %s442_s1 = inlined_call_operand.vmem [shape: f32[32,2], index: 1, kind: input, shape index: {}]   ;;  %s443_s2 = inlined_call_operand.vmem [shape: f32[32,1], index: 2, kind: input, shape index: {}]   ;;  %s444_s3 = inlined_call_operand.vmem [shape: f32[32,1], index: 3, kind: input, shape index: {}]   ;;  %s445_s4 = inlined_call_operand.hbm [shape: f32[1,256], index: 4, kind: output, shape index: {}]  }
   0x1   :  { %v21_v0 = vld [vmem:[%s442_s1 + $0x10] sm:$0xff]  ;;  %v19_v1 = vld [vmem:[%s442_s1] sm:$0xff]  ;;  %273 = vset.pattern.permute.xlu1 %v323_v2  ;;  %272 = vset.pattern.permute.xlu0 %v323_v2  ;;  %v24_v3 = vld [vmem:[%s443_s2 + $0x8] sm:$0xff] }
   0x2   :  { %39 = vperm.xlu1 %273, %v21_v0   ;;  %29 = vperm.xlu0 %272, %v19_v1  }
   0x3   :  { %9 = vsyncpa [#allocation3], 0  ;;  %274 = vset.pattern.permute.xlu2 %v323_v2  ;;  %v23_v4 = vld [vmem:[%s443_s2] sm:$0xff]  ;;  %v20_v5 = vld [vmem:[%s442_s1 + $0x8] sm:$0xff]  ;;  %v324_v6 = vmov 1   ;;  %s260_s15 = sshll.u32 %s445_s4, 4  ;;  %s261_s15 = int_to_ptr.hbm [resolvable:$true] %s260_s15 }
   0x4   :  { %69 = vperm.xlu2 %274, %v24_v3   ;;  %v22_v7 = vld [vmem:[%s442_s1 + $0x18] sm:$0xff]  ;;  %v25_v8 = vld [vmem:[%s443_s2 + $0x10] sm:$0xff]  ;;  %v152_v10 = vld [vmem:[%s444_s3] sm:$0xff]  ;;  %vm245_vm0 = vcmask 1040384  }
   0x5   :  { %v26_v9 = vld [vmem:[%s443_s2 + $0x18] sm:$0xff]  ;;  %v154_v11 = vld [vmem:[%s444_s3 + $0x10] sm:$0xff]  ;;  %v153_v12 = vld [vmem:[%s444_s3 + $0x8] sm:$0xff] }
   0x6   :  { %v155_v13 = vld [vmem:[%s444_s3 + $0x18] sm:$0xff]  ;;  %v18_v17 = vld [vmem:[%s441_s0] sm:$0xf]  ;;  %s325_s0 = smov [#allocation2]  }
   0x7   :  { %v48_v18 = vperm.slane %v18_v17, 0  ;;  %v106_v19 = vperm.slane %v18_v17, 1  ;;  %v49_v21 = vperm.slane %v18_v17, 2  ;;  %v107_v22 = vperm.slane %v18_v17, 3  ;;  %s258_s3 = sshll.u32 %s325_s0, 4  ;;  %s259_s3 = int_to_ptr.vmem [resolvable:$true] %s258_s3 }
   0x9   :  { %v52_v23 = vperm.slane %v48_v18, 0  ;;  %v110_v24 = vperm.slane %v106_v19, 1  ;;  %v53_v25 = vperm.slane %v49_v21, 0  ;;  %v111_v27 = vperm.slane %v107_v22, 1 }
   0xa   :  { %64 = vperm.xlu1 %273, %v23_v4   ;;  %34 = vperm.xlu0 %272, %v20_v5  }
   0xc   :  { %275 = vset.pattern.permute.xlu2 %v324_v6 }
   0xd   :  { %91 = vperm.xlu2 %275, %v19_v1  }
  0x12   :  { %44 = vperm.xlu1 %273, %v22_v7   ;;  %276 = vset.pattern.permute.xlu0 %v324_v6 }
  0x13   :  { %95 = vperm.xlu0 %276, %v20_v5  }
  0x15   :  { %277 = vset.pattern.permute.xlu2 %v323_v2 }
  0x16   :  { %74 = vperm.xlu2 %277, %v25_v8  }
  0x1a   :  { %278 = vset.pattern.permute.xlu1 %v324_v6 }
  0x1b   :  { %99 = vperm.xlu1 %278, %v21_v0   ;;  %103 = vperm.xlu0 %276, %v22_v7  }
  0x1e   :  { %79 = vperm.xlu2 %277, %v26_v9  }
  0x23   :  { %279 = vset.pattern.permute.xlu1 %v323_v2  ;;  %280 = vset.pattern.permute.xlu0 %v323_v2 }
  0x24   :  { %158 = vperm.xlu1 %279, %v152_v10   ;;  %168 = vperm.xlu0 %280, %v154_v11  }
  0x26   :  { %163 = vperm.xlu2 %277, %v153_v12  }
  0x2c   :  { %173 = vperm.xlu1 %279, %v155_v13  }
  0x5e   :  { %v70_v14 = vpop.permute.xlu2 %69 }
  0x67   :  { %v394_v20 = vpop.permute.xlu2 %91 }
  0x68   :  { %v112_v32 = vmul.f32 %v110_v24, %v394_v20  ;;  %v113_v34 = vmul.f32 %v111_v27, %v394_v20 }
  0x70   :  { %v75_v35 = vpop.permute.xlu2 %74 }
  0x74   :  { %v387_v15 = vpop.permute.xlu1 %39  ;;  %v389_v16 = vpop.permute.xlu0 %29 }
  0x75   :  { %v54_v29 = vmul.f32 %v52_v23, %v389_v16  ;;  %v55_v30 = vmul.f32 %v53_v25, %v389_v16  ;;  %v58_v48 = vmul.f32 %v52_v23, %v387_v15  ;;  %v59_v49 = vmul.f32 %v53_v25, %v387_v15 }
  0x77   :  { %v86_v54 = vadd.f32 %v75_v35, %v58_v48  ;;  %v87_v55 = vadd.f32 %v75_v35, %v59_v49 }
  0x78   :  { %v80_v52 = vpop.permute.xlu2 %79 }
  0x7c   :  { %v65_v26 = vpop.permute.xlu1 %64  ;;  %v396_v28 = vpop.permute.xlu0 %34 }
  0x7d   :  { %v82_v31 = vadd.f32 %v65_v26, %v54_v29  ;;  %v83_v33 = vadd.f32 %v65_v26, %v55_v30  ;;  %v56_v36 = vmul.f32 %v52_v23, %v396_v28  ;;  %v57_v37 = vmul.f32 %v53_v25, %v396_v28 }
  0x7f   :  { %v120_v38 = vadd.f32 %v112_v32, %v82_v31  ;;  %v121_v39 = vadd.f32 %v113_v34, %v83_v33  ;;  %v84_v44 = vadd.f32 %v70_v14, %v56_v36  ;;  %v85_v45 = vadd.f32 %v70_v14, %v57_v37 }
  0x80   :  { %v164_v17 = vpop.permute.xlu2 %163 }
  0x81   :  { %281 = vtanh.f32 %v120_v38 }
  0x82   :  { %283 = vtanh.f32 %v121_v39 }
  0x84   :  { %v404_v40 = vpop.permute.xlu1 %44 }
  0x85   :  { %v406_v41 = vpop.permute.xlu0 %95  ;;  %v60_v50 = vmul.f32 %v52_v23, %v404_v40  ;;  %v61_v51 = vmul.f32 %v53_v25, %v404_v40 }
  0x86   :  { %v114_v42 = vmul.f32 %v110_v24, %v406_v41  ;;  %v115_v43 = vmul.f32 %v111_v27, %v406_v41 }
  0x87   :  { %v282_v53 = vpop.eup %281  ;;  %v88_v58 = vadd.f32 %v80_v52, %v60_v50  ;;  %v89_v0 = vadd.f32 %v80_v52, %v61_v51 }
  0x88   :  { %v122_v46 = vadd.f32 %v114_v42, %v84_v44  ;;  %v123_v47 = vadd.f32 %v115_v43, %v85_v45  ;;  %v284_v59 = vpop.eup %283  ;;  %v136_v7 = vmul.f32 %v282_v53, %v282_v53 }
  0x89   :  { %v137_v8 = vmul.f32 %v284_v59, %v284_v59 }
  0x8a   :  { %285 = vtanh.f32 %v122_v46  ;;  %v144_v13 = vsub.f32 1.0, %v136_v7 }
  0x8b   :  { %287 = vtanh.f32 %v123_v47  ;;  %v145_v14 = vsub.f32 1.0, %v137_v8 }
  0x8d   :  { %v414_v56 = vpop.permute.xlu1 %99  ;;  %v416_v57 = vpop.permute.xlu0 %103 }
  0x8e   :  { %v116_v60 = vmul.f32 %v110_v24, %v414_v56  ;;  %v117_v61 = vmul.f32 %v111_v27, %v414_v56  ;;  %v118_v62 = vmul.f32 %v110_v24, %v416_v57  ;;  %v119_v63 = vmul.f32 %v111_v27, %v416_v57 }
  0x90   :  { %v286_v1 = vpop.eup %285  ;;  %v124_v2 = vadd.f32 %v116_v60, %v86_v54  ;;  %v125_v3 = vadd.f32 %v117_v61, %v87_v55  ;;  %v126_v4 = vadd.f32 %v118_v62, %v88_v58  ;;  %v127_v9 = vadd.f32 %v119_v63, %v89_v0 }
  0x91   :  { %v288_v5 = vpop.eup %287  ;;  %v138_v6 = vmul.f32 %v286_v1, %v286_v1 }
  0x92   :  { %v139_v10 = vmul.f32 %v288_v5, %v288_v5  ;;  %289 = vtanh.f32 %v124_v2 }
  0x93   :  { %v146_v11 = vsub.f32 1.0, %v138_v6  ;;  %291 = vtanh.f32 %v125_v3 }
  0x94   :  { %v147_v12 = vsub.f32 1.0, %v139_v10  ;;  %293 = vtanh.f32 %v126_v4 }
  0x95   :  { %295 = vtanh.f32 %v127_v9  ;;  %v178_v19 = vmul.f32 %v164_v17, %v146_v11 }
  0x96   :  { %v159_v18 = vpop.permute.xlu1 %158  ;;  %v179_v21 = vmul.f32 %v164_v17, %v147_v12  ;;  %v169_v37 = vpop.permute.xlu0 %168 }
  0x97   :  { %v176_v22 = vmul.f32 %v159_v18, %v144_v13  ;;  %v177_v23 = vmul.f32 %v159_v18, %v145_v14  ;;  %v186_v33 = vmul.f32 %v178_v19, %v396_v28  ;;  %v214_v44 = vmul.f32 %v178_v19, %v406_v41 }
  0x98   :  { %v290_v24 = vpop.eup %289  ;;  %v187_v34 = vmul.f32 %v179_v21, %v396_v28 }
  0x99   :  { %v292_v25 = vpop.eup %291  ;;  %v184_v27 = vmul.f32 %v176_v22, %v389_v16  ;;  %v185_v29 = vmul.f32 %v177_v23, %v389_v16  ;;  %v140_v30 = vmul.f32 %v290_v24, %v290_v24  ;;  %v212_v35 = vmul.f32 %v176_v22, %v394_v20 }
  0x9a   :  { %v294_v26 = vpop.eup %293  ;;  %v141_v31 = vmul.f32 %v292_v25, %v292_v25  ;;  %v213_v36 = vmul.f32 %v177_v23, %v394_v20  ;;  %v215_v16 = vmul.f32 %v179_v21, %v406_v41 }
  0x9b   :  { %v296_v32 = vpop.eup %295  ;;  %v148_v38 = vsub.f32 1.0, %v140_v30  ;;  %v142_v42 = vmul.f32 %v294_v26, %v294_v26  ;;  %v192_v45 = vadd.f32 %v186_v33, %v184_v27  ;;  %v201_v46 = vadd.f32 %v187_v34, %v185_v29 }
  0x9c   :  { %v149_v39 = vsub.f32 1.0, %v141_v31  ;;  %v143_v43 = vmul.f32 %v296_v32, %v296_v32  ;;  %v220_v50 = vadd.f32 %v214_v44, %v212_v35  ;;  %v229_v28 = vadd.f32 %v215_v16, %v213_v36 }
  0x9d   :  { %v180_v47 = vmul.f32 %v169_v37, %v148_v38  ;;  %v150_v51 = vsub.f32 1.0, %v142_v42  ;;  %v248_v31 = vlaneseq }
  0x9e   :  { %v181_v48 = vmul.f32 %v169_v37, %v149_v39  ;;  %v174_v49 = vpop.permute.xlu1 %173  ;;  %v151_v52 = vsub.f32 1.0, %v143_v43 }
  0x9f   :  { %v188_v20 = vmul.f32 %v180_v47, %v387_v15  ;;  %v216_v54 = vmul.f32 %v180_v47, %v414_v56  ;;  %v182_v58 = vmul.f32 %v174_v49, %v150_v51  ;;  %vm250_vm1 = vcmp.lt.s32.totalorder %v248_v31, 256 }
  0xa0   :  { %v189_v53 = vmul.f32 %v181_v48, %v387_v15  ;;  %v217_v55 = vmul.f32 %v181_v48, %v414_v56  ;;  %v183_v59 = vmul.f32 %v174_v49, %v151_v52 }
  0xa1   :  { %v193_v41 = vadd.f32 %v192_v45, %v188_v20  ;;  %v221_v61 = vadd.f32 %v220_v50, %v216_v54  ;;  %v190_v63 = vmul.f32 %v182_v58, %v404_v40  ;;  %v218_v1 = vmul.f32 %v182_v58, %v416_v57 }
  0xa2   :  { %v202_v60 = vadd.f32 %v201_v46, %v189_v53  ;;  %v230_v62 = vadd.f32 %v229_v28, %v217_v55  ;;  %v191_v0 = vmul.f32 %v183_v59, %v404_v40  ;;  %v219_v2 = vmul.f32 %v183_v59, %v416_v57 }
  0xa3   :  { %v194_v3 = vadd.f32 %v193_v41, %v190_v63  ;;  %v222_v4 = vadd.f32 %v221_v61, %v218_v1 }
  0xa4   :  { %v203_v15 = vadd.f32 %v202_v60, %v191_v0  ;;  %v231_v5 = vadd.f32 %v230_v62, %v219_v2 }
  0xa5   :  { %v195_v6 = vrot.slane %v194_v3, 4  ;;  %v223_v7 = vrot.slane %v222_v4, 4 }
  0xa6   :  { %v204_v56 = vrot.slane %v203_v15, 4  ;;  %v232_v8 = vrot.slane %v231_v5, 4 }
  0xa7   :  { %v196_v9 = vadd.f32 %v195_v6, %v194_v3  ;;  %v224_v11 = vadd.f32 %v223_v7, %v222_v4 }
  0xa8   :  { %v205_v10 = vadd.f32 %v204_v56, %v203_v15  ;;  %v233_v12 = vadd.f32 %v232_v8, %v231_v5 }
  0xa9   :  { %v197_v13 = vrot.slane %v196_v9, 2  ;;  %v225_v17 = vrot.slane %v224_v11, 2 }
  0xaa   :  { %v206_v14 = vrot.slane %v205_v10, 2  ;;  %v234_v40 = vrot.slane %v233_v12, 2 }
  0xab   :  { %v198_v18 = vadd.f32 %v197_v13, %v196_v9  ;;  %v226_v21 = vadd.f32 %v225_v17, %v224_v11 }
  0xac   :  { %v207_v19 = vadd.f32 %v206_v14, %v205_v10  ;;  %v235_v57 = vadd.f32 %v234_v40, %v233_v12 }
  0xad   :  { %v199_v22 = vrot.slane %v198_v18, 1  ;;  %v227_v24 = vrot.slane %v226_v21, 1 }
  0xae   :  { %v208_v23 = vrot.slane %v207_v19, 1  ;;  %v236_v25 = vrot.slane %v235_v57, 1 }
  0xaf   :  { %v200_v26 = vadd.f32 %v199_v22, %v198_v18  ;;  %v228_v29 = vadd.f32 %v227_v24, %v226_v21 }
  0xb0   :  { %v209_v27 = vadd.f32 %v208_v23, %v207_v19  ;;  %v237_v30 = vadd.f32 %v236_v25, %v235_v57 }
  0xb1   :  { %v210_v34 = vmul.f32 %v200_v26, %v200_v26  ;;  %v238_v35 = vmul.f32 %v228_v29, %v228_v29 }
  0xb2   :  { %v211_v32 = vmul.f32 %v209_v27, %v209_v27  ;;  %v239_v33 = vmul.f32 %v237_v30, %v237_v30 }
  0xb3   :  { %v240_v37 = vadd.f32 %v238_v35, %v210_v34 }
  0xb4   :  { %v241_v36 = vadd.f32 %v239_v33, %v211_v32 }
  0xb6   :  { %v244_v38 = vrot.slane %v241_v36, 7 }
  0xb8   :  { %v246_v39 = vsel %vm245_vm0, %v240_v37, %v244_v38 }
  0xb9   :  { %252 = vst.msk [vmem:[#allocation2] sm:$0x3] %vm250_vm1, %v246_v39 }
  0xba   :  { %263 = dma.vmem_to_hbm [thread:$0]  %s259_s3, 32, %s261_s15, [#allocation3]  }
  0xbb   :  { %321 = dma.done.wait [#allocation3], 32  }
  0xbc   :  { %322 = vsyncadd [#allocation3], 4294967264 }
  0xbd   :  { %268 = vsyncpa [#allocation3], 1 }

</bundles_post_ra>
